<compile_context>
chip_gen: v7x
topology: tpu7x:2x2x1
jax: 0.10.0
libtpu: 0.0.40
codegen_flags: <defaults>
</compile_context>

<pallas_src>
from functools import partial

import jax
import jax.numpy as jnp
from jax.experimental import pallas as pl
from jax.experimental.pallas import tpu as pltpu

GAMMA = 2            # module default; focal modulation is (1 - pt) ** GAMMA
IGNORE_INDEX = -100  # F.nll_loss default


def _cdiv(a, b):
    return -(-a // b)


def _hw_defaults():
    """Return (num_splits, vmem_limit_bytes) tuned per TPU generation."""
    vmem_cap = 128 * 1024 * 1024
    try:
        vmem_cap = int(pltpu.get_tpu_info().vmem_capacity_bytes)
    except Exception:
        pass
    if vmem_cap <= 64 * 1024 * 1024:
        # v7x: 64 MiB per TensorCore, 2 TCs -> shard the row loop across cores.
        return 2, 48 * 1024 * 1024
    # v5e / v6e: 128 MiB VMEM, single TensorCore.
    return 1, 96 * 1024 * 1024


def _focal_loss_kernel(logits_ref, target_ref, num_ref, den_ref, *,
                       use_mxu_reductions):
    # grid = (splits, row_tiles_per_split); axis 1 is the reduction axis.
    t = pl.program_id(1)

    # (num, den) accumulators live in the (1, 128) lane-dense output blocks,
    # which stay resident across the "arbitrary" axis (block index depends on s
    # only).
    @pl.when(t == 0)
    def _init():
        num_ref[...] = jnp.zeros_like(num_ref)
        den_ref[...] = jnp.zeros_like(den_ref)

    x = logits_ref[...].astype(jnp.float32)   # (TM, C): bf16/f32 in HBM, f32 compute
    tgt = target_ref[...]                     # (TM, 1) int32

    # --- log-softmax statistics: only lse needs the full class dimension ---
    m = jnp.max(x, axis=1, keepdims=True)                       # (TM, 1)
    z = x - m

    # one-hot mask from a (1, C) iota broadcast against the (TM, 1) targets
    col = jax.lax.broadcasted_iota(jnp.int32, (1, z.shape[1]), 1)
    onehot = col == tgt                                          # (TM, C) bool
    masked_z = jnp.where(onehot, z, 0.0)
    exp_z = jnp.exp(z)

    if use_mxu_reductions:
        # Large C: offload the two full-width sums to the (otherwise idle) MXU,
        # keeping only the max on the XLU.
        ones = jnp.ones((z.shape[1], 1), jnp.float32)
        sum_exp = jnp.dot(exp_z, ones, preferred_element_type=jnp.float32)
        picked_z = jnp.dot(masked_z, ones, preferred_element_type=jnp.float32)
    else:
        sum_exp = jnp.sum(exp_z, axis=1, keepdims=True)          # (TM, 1)
        picked_z = jnp.sum(masked_z, axis=1, keepdims=True)      # (TM, 1)

    lse = jnp.log(sum_exp)                                       # (TM, 1)

    # --- focal modulation on the gathered (TM, 1) column only ---
    logpt_t = picked_z - lse                  # = log_softmax(x)[i, target[i]]
    pt = jnp.exp(logpt_t)
    one_minus_pt = 1.0 - pt
    row_loss = -(one_minus_pt * one_minus_pt * logpt_t)          # gamma = 2

    # --- nll 'mean' bookkeeping ---
    # Padded / garbage rows (ragged last tile, over-allocated split tiles) have
    # target == ignore_index, so they contribute to neither num nor den; any
    # NaN/Inf they produced row-locally is discarded by the select.
    valid = tgt != IGNORE_INDEX                                  # (TM, 1) bool
    tile_num = jnp.sum(jnp.where(valid, row_loss, 0.0), axis=0, keepdims=True)
    tile_den = jnp.sum(valid.astype(jnp.float32), axis=0, keepdims=True)

    # broadcast-accumulate into the lane-dense (1, 128) blocks (every lane holds
    # the same per-split partial; the wrapper reads lane 0 of each split).
    num_ref[...] += tile_num
    den_ref[...] += tile_den


def my_focal_loss(logits, target, *, max_block_rows=8192, num_splits=None,
                  vmem_limit_bytes=None):
    """logits: [N, C] float (bf16 or f32), target: [N] int. Returns scalar f32 loss."""
    n, c = logits.shape
    itemsize = logits.dtype.itemsize

    auto_splits, auto_vmem = _hw_defaults()
    if num_splits is None:
        num_splits = auto_splits
    if vmem_limit_bytes is None:
        vmem_limit_bytes = auto_vmem

    # --- tile sizing: account for what actually lives in VMEM ---
    lane = 128
    c_vmem = _cdiv(c, lane) * lane            # lane-padded class dim in VMEM
    in_row = c_vmem * itemsize                # one input-tile row in VMEM
    f32_row = c_vmem * 4                      # one f32 intermediate row
    tgt_row = lane * 4                        # lane-padded (tm, 1) int32 row
    # 2x double-buffered input, 2x double-buffered target, ~3 live f32 temps.
    per_row_bytes = 2 * in_row + 2 * tgt_row + 3 * f32_row
    tile_budget = int(vmem_limit_bytes * 0.6)

    tm_align = 16 if itemsize < 4 else 8      # bf16 packs 16 rows / vreg
    tm = max(tm_align, min(max_block_rows, tile_budget // per_row_bytes))
    tm = max(tm_align, (tm // tm_align) * tm_align)
    tm = min(tm, _cdiv(n, tm_align) * tm_align)

    n_tiles = _cdiv(n, tm)                    # logits blocks actually covering N
    nsplit = num_splits if n_tiles >= num_splits else 1
    tiles_per_split = _cdiv(n_tiles, nsplit)
    n_pad_rows = nsplit * tiles_per_split * tm

    # Only the tiny target array is padded (ignore_index), never the logits.
    target_p = jnp.pad(target.astype(jnp.int32), (0, n_pad_rows - n),
                       constant_values=IGNORE_INDEX).reshape(n_pad_rows, 1)

    use_mxu_reductions = c >= 512

    # Clamp the logits block index so DMAs never walk past the (unpadded) array;
    # any re-read rows are masked out by the padded targets anyway.
    last_logit_block = n_tiles - 1

    cost = pl.CostEstimate(
        flops=int(6 * n * c),
        transcendentals=int(n * c + 3 * n),
        bytes_accessed=int(n * c * itemsize + n_pad_rows * 4 + 2 * nsplit * 128 * 4),
    )

    num_out, den_out = pl.pallas_call(
        partial(_focal_loss_kernel, use_mxu_reductions=use_mxu_reductions),
        out_shape=(
            jax.ShapeDtypeStruct((1, nsplit * 128), jnp.float32),
            jax.ShapeDtypeStruct((1, nsplit * 128), jnp.float32),
        ),
        grid_spec=pltpu.PrefetchScalarGridSpec(
            num_scalar_prefetch=0,
            grid=(nsplit, tiles_per_split),
            in_specs=[
                pl.BlockSpec(
                    (tm, c),
                    lambda s, t: (jnp.minimum(s * tiles_per_split + t,
                                              last_logit_block), 0)),
                pl.BlockSpec((tm, 1), lambda s, t: (s * tiles_per_split + t, 0)),
            ],
            out_specs=(
                pl.BlockSpec((1, 128), lambda s, t: (0, s)),
                pl.BlockSpec((1, 128), lambda s, t: (0, s)),
            ),
        ),
        compiler_params=pltpu.CompilerParams(
            dimension_semantics=("parallel", "arbitrary"),
            vmem_limit_bytes=vmem_limit_bytes,
        ),
        cost_estimate=cost,
    )(logits, target_p)

    num = jnp.sum(num_out.reshape(nsplit, 128)[:, 0])
    den = jnp.sum(den_out.reshape(nsplit, 128)[:, 0])
    # NaN if every row is ignored -- same as torch's mean reduction in that case.
    return num / den


def _reference(logits, target):
    x = logits.astype(jnp.float32)
    logpt = jax.nn.log_softmax(x, axis=1)
    pt = jnp.exp(logpt)
    mod = ((1.0 - pt) ** GAMMA) * logpt
    idx = jnp.clip(target.astype(jnp.int32), 0, x.shape[1] - 1)
    picked = jnp.take_along_axis(mod, idx[:, None], axis=1)[:, 0]
    valid = target != IGNORE_INDEX
    return jnp.sum(jnp.where(valid, -picked, 0.0)) / jnp.sum(valid.astype(jnp.float32))


if __name__ == "__main__":
    # batch=2, seq=8 -> N = 16 flattened rows, C = 32 labels
    batch, seq, num_labels = 2, 8, 32
    n = batch * seq

    key = jax.random.PRNGKey(0)
    k_logits, k_target = jax.random.split(key)
    # feed bf16 directly into the kernel (no f32 pre-cast in the wrapper)
    logits = jax.random.normal(k_logits, (n, num_labels), dtype=jnp.float32).astype(jnp.bfloat16)
    target = jax.random.randint(k_target, (n,), 0, num_labels, dtype=jnp.int32)
    target = target.at[3].set(IGNORE_INDEX)   # exercise the ignore_index path

    loss = my_focal_loss(logits, target)
    jax.block_until_ready(loss)

    ref = _reference(logits, target)
    assert jnp.allclose(loss, ref, atol=1e-5, rtol=1e-5), (loss, ref)
    print("KERNEL_OK")
</pallas_src>

<mosaic_0001>
module attributes {stable_mosaic.version = 11 : i64} {
  func.func @_focal_loss_kernel(%arg0: i32, %arg1: i32, %arg2: memref<16x32xbf16, #tpu.memory_space<vmem>>, %arg3: memref<16x1xi32, #tpu.memory_space<vmem>>, %arg4: memref<1x128xf32, #tpu.memory_space<vmem>>, %arg5: memref<1x128xf32, #tpu.memory_space<vmem>>) attributes {dimension_semantics = [#tpu.dimension_semantics<parallel>, #tpu.dimension_semantics<arbitrary>], iteration_bounds = array<i64: 1, 1>, scalar_prefetch = 0 : i64, scratch_operands = 0 : i64, tpu.core_type = #tpu.core_type<tc>, window_params = [{transform_indices = @transform_0, window_bounds = array<i64: 16, 32>}, {transform_indices = @transform_1, window_bounds = array<i64: 16, 1>}, {transform_indices = @transform_2, window_bounds = array<i64: 1, 128>}, {transform_indices = @transform_3, window_bounds = array<i64: 1, 128>}]} {
    %c0_i32 = arith.constant 0 : i32
    %0 = arith.cmpi eq, %arg1, %c0_i32 : i32
    %1 = arith.extui %0 : i1 to i32
    %c0_i32_0 = arith.constant 0 : i32
    %2 = arith.cmpi ne, %1, %c0_i32_0 : i32
    scf.if %2 {
      %cst_20 = arith.constant 0.000000e+00 : f32
      %48 = vector.broadcast %cst_20 : f32 to vector<1x128xf32>
      %c0_21 = arith.constant 0 : index
      %c0_22 = arith.constant 0 : index
      %49 = vector.load %arg4[%c0_21, %c0_22] : memref<1x128xf32, #tpu.memory_space<vmem>>, vector<1x128xf32>
      tpu.vector_store %arg4[%c0_21, %c0_22], %48 {strides = array<i32>} : memref<1x128xf32, #tpu.memory_space<vmem>>, vector<1x128xf32>,
      %cst_23 = arith.constant 0.000000e+00 : f32
      %50 = vector.broadcast %cst_23 : f32 to vector<1x128xf32>
      %c0_24 = arith.constant 0 : index
      %c0_25 = arith.constant 0 : index
      %51 = vector.load %arg5[%c0_24, %c0_25] : memref<1x128xf32, #tpu.memory_space<vmem>>, vector<1x128xf32>
      tpu.vector_store %arg5[%c0_24, %c0_25], %50 {strides = array<i32>} : memref<1x128xf32, #tpu.memory_space<vmem>>, vector<1x128xf32>,
    } else {
    }
    %c0 = arith.constant 0 : index
    %c0_1 = arith.constant 0 : index
    %3 = vector.load %arg2[%c0, %c0_1] : memref<16x32xbf16, #tpu.memory_space<vmem>>, vector<16x32xbf16>
    %4 = arith.extf %3 : vector<16x32xbf16> to vector<16x32xf32>
    %c0_2 = arith.constant 0 : index
    %c0_3 = arith.constant 0 : index
    %5 = vector.load %arg3[%c0_2, %c0_3] : memref<16x1xi32, #tpu.memory_space<vmem>>, vector<16x1xi32>
    %cst = arith.constant dense<0xFF800000> : vector<16xf32>
    %6 = vector.multi_reduction <maximumf>, %4, %cst [1] : vector<16x32xf32> to vector<16xf32>
    %7 = vector.shape_cast %6 : vector<16xf32> to vector<16x1xf32>
    %8 = vector.broadcast %7 : vector<16x1xf32> to vector<16x32xf32>
    %9 = arith.subf %4, %8 : vector<16x32xf32>
    %10 = tpu.iota {dimensions = array<i32: 1>} : vector<1x32xi32>
    %11 = vector.broadcast %10 : vector<1x32xi32> to vector<16x32xi32>
    %12 = vector.broadcast %5 : vector<16x1xi32> to vector<16x32xi32>
    %13 = arith.cmpi eq, %11, %12 : vector<16x32xi32>
    %cst_4 = arith.constant 0.000000e+00 : f32
    %14 = vector.broadcast %cst_4 : f32 to vector<16x32xf32>
    %15 = arith.select %13, %9, %14 : vector<16x32xi1>, vector<16x32xf32>
    %16 = math.exp %9 : vector<16x32xf32>
    %cst_5 = arith.constant dense<0.000000e+00> : vector<16xf32>
    %17 = vector.multi_reduction <add>, %16, %cst_5 [1] : vector<16x32xf32> to vector<16xf32>
    %18 = vector.shape_cast %17 : vector<16xf32> to vector<16x1xf32>
    %cst_6 = arith.constant dense<0.000000e+00> : vector<16xf32>
    %19 = vector.multi_reduction <add>, %15, %cst_6 [1] : vector<16x32xf32> to vector<16xf32>
    %20 = vector.shape_cast %19 : vector<16xf32> to vector<16x1xf32>
    %21 = math.log %18 : vector<16x1xf32>
    %22 = arith.subf %20, %21 : vector<16x1xf32>
    %23 = math.exp %22 : vector<16x1xf32>
    %cst_7 = arith.constant 1.000000e+00 : f32
    %24 = vector.broadcast %cst_7 : f32 to vector<16x1xf32>
    %25 = arith.subf %24, %23 : vector<16x1xf32>
    %26 = arith.mulf %25, %25 : vector<16x1xf32>
    %27 = arith.mulf %26, %22 : vector<16x1xf32>
    %cst_8 = arith.constant 0.000000e+00 : f32
    %28 = vector.broadcast %cst_8 : f32 to vector<16x1xf32>
    %29 = arith.subf %28, %27 : vector<16x1xf32>
    %c-100_i32 = arith.constant -100 : i32
    %30 = vector.broadcast %c-100_i32 : i32 to vector<16x1xi32>
    %31 = arith.cmpi ne, %5, %30 : vector<16x1xi32>
    %cst_9 = arith.constant 0.000000e+00 : f32
    %32 = vector.broadcast %cst_9 : f32 to vector<16x1xf32>
    %33 = arith.select %31, %29, %32 : vector<16x1xi1>, vector<16x1xf32>
    %cst_10 = arith.constant dense<0.000000e+00> : vector<1xf32>
    %34 = vector.multi_reduction <add>, %33, %cst_10 [0] : vector<16x1xf32> to vector<1xf32>
    %35 = vector.shape_cast %34 : vector<1xf32> to vector<1x1xf32>
    %36 = arith.extui %31 : vector<16x1xi1> to vector<16x1xi32>
    %37 = arith.sitofp %36 : vector<16x1xi32> to vector<16x1xf32>
    %cst_11 = arith.constant dense<0.000000e+00> : vector<1xf32>
    %38 = vector.multi_reduction <add>, %37, %cst_11 [0] : vector<16x1xf32> to vector<1xf32>
    %39 = vector.shape_cast %38 : vector<1xf32> to vector<1x1xf32>
    %c0_12 = arith.constant 0 : index
    %c0_13 = arith.constant 0 : index
    %40 = vector.load %arg4[%c0_12, %c0_13] : memref<1x128xf32, #tpu.memory_space<vmem>>, vector<1x128xf32>
    %41 = vector.broadcast %35 : vector<1x1xf32> to vector<1x128xf32>
    %42 = arith.addf %40, %41 : vector<1x128xf32>
    %c0_14 = arith.constant 0 : index
    %c0_15 = arith.constant 0 : index
    %43 = vector.load %arg4[%c0_14, %c0_15] : memref<1x128xf32, #tpu.memory_space<vmem>>, vector<1x128xf32>
    tpu.vector_store %arg4[%c0_14, %c0_15], %42 {strides = array<i32>} : memref<1x128xf32, #tpu.memory_space<vmem>>, vector<1x128xf32>,
    %c0_16 = arith.constant 0 : index
    %c0_17 = arith.constant 0 : index
    %44 = vector.load %arg5[%c0_16, %c0_17] : memref<1x128xf32, #tpu.memory_space<vmem>>, vector<1x128xf32>
    %45 = vector.broadcast %39 : vector<1x1xf32> to vector<1x128xf32>
    %46 = arith.addf %44, %45 : vector<1x128xf32>
    %c0_18 = arith.constant 0 : index
    %c0_19 = arith.constant 0 : index
    %47 = vector.load %arg5[%c0_18, %c0_19] : memref<1x128xf32, #tpu.memory_space<vmem>>, vector<1x128xf32>
    tpu.vector_store %arg5[%c0_18, %c0_19], %46 {strides = array<i32>} : memref<1x128xf32, #tpu.memory_space<vmem>>, vector<1x128xf32>,
    return
  }
  func.func @transform_0(%arg0: i32, %arg1: i32) -> (i32, i32) {
    %c1_i32 = arith.constant 1 : i32
    %0 = arith.muli %arg0, %c1_i32 : i32
    %1 = arith.addi %0, %arg1 : i32
    %c0_i32 = arith.constant 0 : i32
    %2 = arith.minsi %1, %c0_i32 : i32
    %c0_i32_0 = arith.constant 0 : i32
    %c0_i32_1 = arith.constant 0 : i32
    return %2, %c0_i32_0 : i32, i32
  }
  func.func @transform_1(%arg0: i32, %arg1: i32) -> (i32, i32) {
    %c1_i32 = arith.constant 1 : i32
    %0 = arith.muli %arg0, %c1_i32 : i32
    %1 = arith.addi %0, %arg1 : i32
    %c0_i32 = arith.constant 0 : i32
    %c0_i32_0 = arith.constant 0 : i32
    return %1, %c0_i32 : i32, i32
  }
  func.func @transform_2(%arg0: i32, %arg1: i32) -> (i32, i32) {
    %c0_i32 = arith.constant 0 : i32
    %c0_i32_0 = arith.constant 0 : i32
    return %c0_i32, %arg0 : i32, i32
  }
  func.func @transform_3(%arg0: i32, %arg1: i32) -> (i32, i32) {
    %c0_i32 = arith.constant 0 : i32
    %c0_i32_0 = arith.constant 0 : i32
    return %c0_i32, %arg0 : i32, i32
  }
}

</mosaic_0001>

<bundles_post_ra>
// kernel: tpu_custom_call.1
= control target key start
LH: loop header
LB: loop body
LE: loop exit
PB: predicated region body
PF: predicated region fallthrough
CT: control target
= control target key end

     0   :  { %9 = vsyncpa [#allocation3], 0  ;;  %s431_s0 = inlined_call_operand.hbm [shape: bf16[16,32], index: 0, kind: input, shape index: {}]   ;;  %s432_s1 = inlined_call_operand.hbm [shape: s32[16,1], index: 1, kind: input, shape index: {}]   ;;  %s433_s2 = inlined_call_operand.hbm [shape: f32[1,128], index: 2, kind: output, shape index: {0}]   ;;  %s434_s3 = inlined_call_operand.hbm [shape: f32[1,128], index: 3, kind: output, shape index: {1}]  }
   0x1   :  { %10 = vsyncpa [#allocation6], 0 }
   0x2   :  { %11 = vsyncpa [#allocation4], 0 }
   0x3   :  { %12 = vsyncpa [#allocation9], 0  ;;  %s327_s12 = smov [#allocation2]   ;;  %s231_s16 = scalar_lea.hbm %s431_s0, 128 }
   0x4   :  { %s24_s13 = sshll.u32 %s327_s12, 4  ;;  %p232_p0 = scmp.ne.s32.totalorder %s431_s0, %s231_s16  ;;  %s25_s13 = int_to_ptr.vmem [resolvable:$true] %s24_s13 }
   0x5   :  { %p235_p1 = scmp.lt.u32.totalorder %s231_s16, %s431_s0 }
   0x7   :  { %p237_p2 = pnand %p235_p1, %p232_p0 }
   0x9   :  { %240 = shalt.err (!%p237_p2)
}
   0xa   :  { %s241_s21 = scalar_lea.vmem %s25_s13, 128  ;;  %p246_p4 = scmp.lt.s32.totalorder %s25_s13, %s25_s13 }
   0xb   :  { %p242_p3 = scmp.ne.s32.totalorder %s25_s13, %s241_s21  ;;  %p247_p5 = scmp.lt.s32.totalorder %s241_s21, %s241_s21 }
   0xd   :  { %p248_p6 = por %p247_p5, %p246_p4 }
   0xf   :  { %p249_p7 = pnand %p248_p6, %p242_p3 }
  0x11   :  { %252 = shalt.err (!%p249_p7)
}
  0x12   :  { %s328_s22 = smov 64   ;;  %s329_s23 = smov 4  }
  0x13   :  { %30 = dma.hbm_to_vmem [thread:$0]  %s431_s0, 128, %s25_s13, [#allocation3], %s328_s22, %s328_s22, %s329_s23  }
  0x14   :  { %s330_s26 = smov [#allocation5]   ;;  %s253_s30 = scalar_lea.hbm %s432_s1, 256 }
  0x15   :  { %s40_s27 = sshll.u32 %s330_s26, 4  ;;  %p254_p8 = scmp.ne.s32.totalorder %s432_s1, %s253_s30  ;;  %s41_s27 = int_to_ptr.vmem [resolvable:$true] %s40_s27 }
  0x16   :  { %p257_p9 = scmp.lt.u32.totalorder %s253_s30, %s432_s1 }
  0x18   :  { %p259_p10 = pnand %p257_p9, %p254_p8 }
  0x1a   :  { %262 = shalt.err (!%p259_p10)
}
  0x1b   :  { %s263_s8 = scalar_lea.vmem %s41_s27, 256  ;;  %p268_p12 = scmp.lt.s32.totalorder %s41_s27, %s41_s27 }
  0x1c   :  { %p264_p11 = scmp.ne.s32.totalorder %s41_s27, %s263_s8  ;;  %p269_p13 = scmp.lt.s32.totalorder %s263_s8, %s263_s8 }
  0x1e   :  { %p270_p0 = por %p269_p13, %p268_p12 }
  0x20   :  { %p271_p1 = pnand %p270_p0, %p264_p11 }
  0x22   :  { %274 = shalt.err (!%p271_p1)
}
  0x23   :  { %s331_s0 = smov 128   ;;  %s332_s9 = smov 8  }
  0x24   :  { %46 = dma.hbm_to_vmem [thread:$0]  %s432_s1, 256, %s41_s27, [#allocation6], %s331_s0, %s331_s0, %s332_s9  }
  0x25   :  { %319 = dma.done.wait [#allocation3], 128  }
  0x26   :  { %320 = vsyncadd [#allocation3], 4294967168 }
  0x27   :  { %321 = dma.done.wait [#allocation6], 256  }
  0x28   :  { %322 = vsyncadd [#allocation6], 4294967040  ;;  %v333_v0 = vmov 0.0   ;;  %v334_v1 = vmov 0   ;;  %v204_v2 = vld [vmem:[#allocation2] sm:$0xff]   ;;  %vm71_vm0 = vcmask 261120   ;;  %v80_v16 = vlaneseq }
  0x29   :  { %63 = vst [vmem:[#allocation7] sm:$0x1] %v333_v0  ;;  %64 = vst [vmem:[#allocation8] sm:$0x1] %v333_v0  ;;  %217 = vset.pattern.permute.xlu1 %v334_v1  ;;  %218 = vset.pattern.permute.xlu0 %v334_v1  ;;  %v381_v3 = vld [vmem:[#allocation5] sm:$0xff]  ;;  %v205_v4 = vunpack.c.l.bf16 %v204_v2  ;;  %v206_v5 = vunpack.c.h.bf16 %v204_v2  ;;  %v384_v6 = vld [vmem:[#allocation5 + $0x8] sm:$0xff] }
  0x2a   :  { %83 = vperm.xlu1 %217, %v381_v3   ;;  %vm126_vm1 = vcmp.ne.s32.totalorder %v381_v3, 4294967196  ;;  %vm127_vm2 = vcmp.ne.s32.totalorder %v384_v6, 4294967196  ;;  %vm130_vm3 = vcmask 7168   ;;  %v81_v22 = vand.u32 127, %v80_v16  ;;  %s335_s1 = smov [#allocation8]  }
  0x2b   :  { %v72_v7 = vsel %vm71_vm0, %v205_v4, -inf  ;;  %v75_v8 = vsel %vm71_vm0, %v206_v5, -inf  ;;  %v201_v12 = vsel %vm126_vm1, 1.0, %v333_v0  ;;  %v202_v13 = vsel %vm127_vm2, 1.0, %v333_v0  ;;  %s185_s12 = sshll.u32 %s335_s1, 4  ;;  %s186_s12 = int_to_ptr.vmem [resolvable:$true] %s185_s12 }
  0x2c   :  { %73 = vmax.xlane.f32.xlu0 %v72_v7  ;;  %v144_v17 = vsel %vm130_vm3, %v201_v12, 0.0  ;;  %v145_v18 = vsel %vm130_vm3, %v202_v13, 0.0  ;;  %s275_s13 = scalar_lea.vmem %s186_s12, 16  ;;  %s279_s14 = scalar_lea.vmem %s186_s12, 32 }
  0x2d   :  { %v146_v21 = vadd.f32 %v145_v18, %v144_v17  ;;  %p276_p2 = scmp.ne.s32.totalorder %s186_s12, %s275_s13  ;;  %p280_p3 = scmp.lt.s32.totalorder %s186_s12, %s186_s12 }
  0x2e   :  { %86 = vperm.xlu1 %217, %v384_v6   ;;  %p281_p4 = scmp.lt.s32.totalorder %s279_s14, %s275_s13 }
  0x2f   :  { %v147_v23 = vrot.slane %v146_v21, 4 }
  0x30   :  { %76 = vmax.xlane.f32.xlu0 %v75_v8  ;;  %v161_v40 = vld [vmem:[#allocation8] sm:$0x1]  ;;  %p282_p5 = por %p281_p4, %p280_p3 }
  0x31   :  { %v148_v28 = vadd.f32 %v147_v23, %v146_v21 }
  0x32   :  { %p283_p6 = pnand %p282_p5, %p276_p2 }
  0x33   :  { %v149_v33 = vrot.slane %v148_v28, 2 }
  0x35   :  { %v150_v35 = vadd.f32 %v149_v33, %v148_v28 }
  0x37   :  { %v151_v36 = vrot.slane %v150_v35, 1 }
  0x39   :  { %v152_v37 = vadd.f32 %v151_v36, %v150_v35 }
  0xa9   :  { %v84_v20 = vpop.permute.xlu1 %83 }
  0xaa   :  { %vm88_vm4 = vcmp.eq.s32.totalorder %v81_v22, %v84_v20 }
  0xad   :  { %v87_v25 = vpop.permute.xlu1 %86 }
  0xae   :  { %vm89_vm5 = vcmp.eq.s32.totalorder %v81_v22, %v87_v25 }
  0xb9   :  { %v74_v9 = vpop.xlane.xlu0 %73 }
  0xba   :  { %v78_v10 = vsub.f32 %v205_v4, %v74_v9 }
  0xbc   :  { %v92_v11 = vmul.f32 1.442695, %v78_v10  ;;  %v90_v27 = vsel %vm88_vm4, %v78_v10, 0.0 }
  0xbd   :  { %v77_v14 = vpop.xlane.xlu0 %76  ;;  %v102_v30 = vsel %vm71_vm0, %v90_v27, 0.0 }
  0xbe   :  { %219 = vpow2.f32 %v92_v11  ;;  %v79_v15 = vsub.f32 %v206_v5, %v77_v14 }
  0xc0   :  { %v94_v19 = vmul.f32 1.442695, %v79_v15  ;;  %v91_v32 = vsel %vm89_vm5, %v79_v15, 0.0 }
  0xc1   :  { %v105_v34 = vsel %vm71_vm0, %v91_v32, 0.0 }
  0xc2   :  { %221 = vpow2.f32 %v94_v19 }
  0xc8   :  { %v220_v24 = vpop.eup %219 }
  0xc9   :  { %v96_v26 = vsel %vm71_vm0, %v220_v24, 0.0 }
  0xca   :  { %97 = vadd.xlane.f32.xlu0 %v96_v26 }
  0xcc   :  { %v222_v29 = vpop.eup %221 }
  0xcd   :  { %v99_v31 = vsel %vm71_vm0, %v222_v29, 0.0 }
  0xce   :  { %103 = vadd.xlane.f32.xlu0 %v102_v30  ;;  %100 = vadd.xlane.f32.xlu1 %v99_v31 }
  0xd2   :  { %106 = vadd.xlane.f32.xlu0 %v105_v34 }
  0xdf   :  { %164 = vperm.xlu1 %217, %v152_v37  }
 0x157   :  { %v98_v38 = vpop.xlane.xlu0 %97 }
 0x158   :  { %223 = vlog2.f32 %v98_v38 }
 0x15b   :  { %v101_v39 = vpop.xlane.xlu1 %100  ;;  %v104_v44 = vpop.xlane.xlu0 %103 }
 0x15c   :  { %225 = vlog2.f32 %v101_v39 }
 0x15f   :  { %v165_v41 = vpop.permute.xlu1 %164  ;;  %v107_v50 = vpop.xlane.xlu0 %106 }
 0x160   :  { %v167_v42 = vadd.f32 %v165_v41, %v161_v40 }
 0x162   :  { %v224_v43 = vpop.eup %223  ;;  %168 = vst [vmem:[#allocation8] sm:$0x1] %v167_v42 }
 0x163   :  { %v109_v45 = vmul.f32 0.6931472, %v224_v43 }
 0x165   :  { %v112_v46 = vsub.f32 %v104_v44, %v109_v45 }
 0x166   :  { %v226_v47 = vpop.eup %225 }
 0x167   :  { %v114_v48 = vmul.f32 1.442695, %v112_v46  ;;  %v111_v49 = vmul.f32 0.6931472, %v226_v47 }
 0x169   :  { %227 = vpow2.f32 %v114_v48  ;;  %v113_v51 = vsub.f32 %v107_v50, %v111_v49 }
 0x16b   :  { %v116_v52 = vmul.f32 1.442695, %v113_v51 }
 0x16d   :  { %229 = vpow2.f32 %v116_v52 }
 0x173   :  { %v228_v53 = vpop.eup %227 }
 0x174   :  { %v118_v54 = vsub.f32 1.0, %v228_v53 }
 0x176   :  { %v120_v55 = vmul.f32 %v118_v54, %v118_v54 }
 0x177   :  { %v230_v56 = vpop.eup %229 }
 0x178   :  { %v122_v57 = vmul.f32 %v120_v55, %v112_v46  ;;  %v119_v58 = vsub.f32 1.0, %v230_v56 }
 0x17a   :  { %v124_v59 = vsub.f32 0.0, %v122_v57  ;;  %v121_v60 = vmul.f32 %v119_v58, %v119_v58 }
 0x17c   :  { %v123_v61 = vmul.f32 %v121_v60, %v113_v51  ;;  %v128_v62 = vsel %vm126_vm1, %v124_v59, 0.0 }
 0x17d   :  { %v131_v1 = vsel %vm130_vm3, %v128_v62, 0.0 }
 0x17e   :  { %v125_v63 = vsub.f32 0.0, %v123_v61 }
 0x180   :  { %v129_v0 = vsel %vm127_vm2, %v125_v63, 0.0 }
 0x181   :  { %v132_v2 = vsel %vm130_vm3, %v129_v0, 0.0 }
 0x182   :  { %v133_v4 = vadd.f32 %v132_v2, %v131_v1 }
 0x184   :  { %v134_v5 = vrot.slane %v133_v4, 4 }
 0x186   :  { %v135_v7 = vadd.f32 %v134_v5, %v133_v4 }
 0x188   :  { %v136_v8 = vrot.slane %v135_v7, 2 }
 0x18a   :  { %v137_v9 = vadd.f32 %v136_v8, %v135_v7 }
 0x18c   :  { %v138_v10 = vrot.slane %v137_v9, 1 }
 0x18e   :  { %v139_v11 = vadd.f32 %v138_v10, %v137_v9 }
 0x190   :  { %156 = vperm.xlu0 %218, %v139_v11  }
 0x191   :  { %286 = shalt.err (!%p283_p6)
}
 0x192   :  { %s287_s17 = scalar_lea.hbm %s434_s3, 16 }
 0x193   :  { %p288_p7 = scmp.ne.s32.totalorder %s434_s3, %s287_s17  ;;  %p291_p8 = scmp.lt.u32.totalorder %s287_s17, %s434_s3 }
 0x195   :  { %p293_p9 = pnand %p291_p8, %p288_p7 }
 0x197   :  { %296 = shalt.err (!%p293_p9)
}
 0x198   :  { %188 = dma.vmem_to_hbm [thread:$0]  %s186_s12, 16, %s434_s3, [#allocation9]   ;;  %v153_v3 = vld [vmem:[#allocation7] sm:$0x1] }
 0x199   :  { %s336_s24 = smov [#allocation7]  }
 0x19a   :  { %s175_s25 = sshll.u32 %s336_s24, 4  ;;  %s176_s25 = int_to_ptr.vmem [resolvable:$true] %s175_s25 }
 0x19b   :  { %s297_s26 = scalar_lea.vmem %s176_s25, 16  ;;  %s301_s27 = scalar_lea.vmem %s176_s25, 32 }
 0x19c   :  { %p298_p10 = scmp.ne.s32.totalorder %s176_s25, %s297_s26  ;;  %p302_p11 = scmp.lt.s32.totalorder %s176_s25, %s176_s25 }
 0x19d   :  { %p303_p12 = scmp.lt.s32.totalorder %s301_s27, %s297_s26 }
 0x19f   :  { %p304_p13 = por %p303_p12, %p302_p11 }
 0x1a1   :  { %p305_p0 = pnand %p304_p13, %p298_p10 }
 0x20f   :  { %v157_v6 = vpop.permute.xlu0 %156 }
 0x210   :  { %v159_v12 = vadd.f32 %v157_v6, %v153_v3 }
 0x212   :  { %160 = vst [vmem:[#allocation7] sm:$0x1] %v159_v12 }
 0x213   :  { %308 = shalt.err (!%p305_p0)
}
 0x214   :  { %s309_s30 = scalar_lea.hbm %s433_s2, 16 }
 0x215   :  { %p310_p1 = scmp.ne.s32.totalorder %s433_s2, %s309_s30  ;;  %p313_p2 = scmp.lt.u32.totalorder %s309_s30, %s433_s2 }
 0x217   :  { %p315_p3 = pnand %p313_p2, %p310_p1 }
 0x219   :  { %318 = shalt.err (!%p315_p3)
}
 0x21a   :  { %178 = dma.vmem_to_hbm [thread:$0]  %s176_s25, 16, %s433_s2, [#allocation4]  }
 0x21b   :  { %323 = dma.done.wait [#allocation4], 16  }
 0x21c   :  { %324 = vsyncadd [#allocation4], 4294967280 }
 0x21d   :  { %325 = dma.done.wait [#allocation9], 16  }
 0x21e   :  { %326 = vsyncadd [#allocation9], 4294967280 }
 0x21f   :  { %195 = vsyncpa [#allocation3], 1 }
 0x220   :  { %196 = vsyncpa [#allocation6], 1 }
 0x221   :  { %197 = vsyncpa [#allocation4], 1 }
 0x222   :  { %198 = vsyncpa [#allocation9], 1 }

</bundles_post_ra>
